<compile_context>
chip_gen: v5e
topology: v5e:2x2
jax: 0.10.0
libtpu: 0.0.40
codegen_flags: <defaults>
</compile_context>

<pallas_src>
import math

import jax
import jax.numpy as jnp
from jax.experimental import pallas as pl
from jax.experimental.pallas import tpu as pltpu


_LANE = 128                              # TPU vreg lane width
_MAX_COLS = 1024                         # lane-dense slab width (multiple of 128)
_TARGET_TILE_BYTES = 2 * 1024 * 1024     # per-operand tile; x2 operands x2 buffers
                                         # = 8 MiB VMEM, well under default limits


def _copy_kernel(x_ref, o_ref):
    # Pure identity copy of one (block_rows, cols) lane-dense tile.
    o_ref[...] = x_ref[...]


def _lane_dense_view(total):
    """Pick a (rows, cols) 2-D view of a flat buffer with cols a large multiple of 128."""
    if total == 0 or total % _LANE != 0:
        return None
    cols = _LANE
    while cols * 2 <= _MAX_COLS and total % (cols * 2) == 0:
        cols *= 2
    return total // cols, cols


def _pick_block_rows(rows, cols, itemsize):
    if rows % 8 != 0:
        # Block's second-to-last dim must be a multiple of 8 OR the full extent.
        return rows
    br = (_TARGET_TILE_BYTES // (cols * itemsize)) // 8 * 8
    br = max(8, br)
    return min(rows, br)


def _pallas_identity_copy(x: jax.Array):
    """Tiled lane-dense copy of x through a Pallas kernel (same shape / dtype).

    Returns None if the buffer cannot be presented as a (8,128)-friendly 2-D view.
    """
    total = math.prod(x.shape)
    view = _lane_dense_view(total)
    if view is None:
        return None
    rows, cols = view
    x2d = x.reshape(rows, cols)  # contiguous reshape: metadata-only, free
    block_rows = _pick_block_rows(rows, cols, x.dtype.itemsize)
    grid = (pl.cdiv(rows, block_rows),)

    out2d = pl.pallas_call(
        _copy_kernel,
        out_shape=jax.ShapeDtypeStruct((rows, cols), x.dtype),
        grid=grid,
        in_specs=[pl.BlockSpec((block_rows, cols), lambda i: (i, 0))],
        out_specs=pl.BlockSpec((block_rows, cols), lambda i: (i, 0)),
        compiler_params=pltpu.CompilerParams(
            # Independent row tiles: lets v7x shard the mem-bound copy over
            # both TensorCores; harmless no-op on single-TC v5e / v6e.
            dimension_semantics=("parallel",)),
    )(x2d)
    return out2d.reshape(x.shape)


def unsqueeze_pallas(x: jax.Array, dim: int) -> jax.Array:
    """torch.Tensor.unsqueeze(dim) semantics; data path runs through Pallas."""
    out_ndim = x.ndim + 1
    if not -out_ndim <= dim < out_ndim:
        raise ValueError(f"dim {dim} out of range for result rank {out_ndim}")
    if dim < 0:
        dim += out_ndim
    out_shape = x.shape[:dim] + (1,) + x.shape[dim:]

    copied = _pallas_identity_copy(x)
    if copied is None:
        # Tiny / odd / rank-0 buffers that don't map onto a (8,128) lane-dense
        # view: unsqueeze is metadata-only anyway, so take the free reshape.
        # TODO(synk): pad-and-mask copy kernel for non-lane-aligned shapes.
        return x.reshape(out_shape)
    # Size-1 axis insertion is a free metadata reshape on the copied buffer.
    return copied.reshape(out_shape)


class Unsqueeze:
    """JAX/Pallas port of capit.models.base.Unsqueeze (no parameters)."""

    def __init__(self, dim: int):
        self.dim = dim

    def __call__(self, x: jax.Array) -> jax.Array:
        return unsqueeze_pallas(x, self.dim)


if __name__ == "__main__":
    key = jax.random.PRNGKey(0)
    x = jax.random.normal(key, (2, 4, 16, 16), dtype=jnp.float32)  # NCHW

    # dim=1: (2,4,16,16) -> (2,1,4,16,16), lane-dense single-tile copy kernel.
    y = Unsqueeze(dim=1)(x)
    jax.block_until_ready(y)
    assert y.shape == (2, 1, 4, 16, 16), y.shape
    assert y.dtype == x.dtype
    assert jnp.array_equal(y, jnp.expand_dims(x, 1))

    # Negative / trailing dim (no special branch needed: copy is over the flat
    # buffer, axis insertion is a free reshape).
    y2 = Unsqueeze(dim=-1)(x)
    jax.block_until_ready(y2)
    assert y2.shape == (2, 4, 16, 16, 1), y2.shape
    assert jnp.array_equal(y2, jnp.expand_dims(x, -1))

    # Larger input exercising the multi-tile (grid > 1) pipelined copy path.
    xb = jax.random.normal(jax.random.PRNGKey(1), (2, 4, 256, 512), jnp.float32)
    yb = Unsqueeze(dim=2)(xb)
    jax.block_until_ready(yb)
    assert yb.shape == (2, 4, 1, 256, 512), yb.shape
    assert jnp.array_equal(yb, jnp.expand_dims(xb, 2))

    # Non-lane-aligned shape takes the metadata-only fallback.
    xo = jax.random.normal(jax.random.PRNGKey(2), (3, 5, 7), jnp.float32)
    yo = Unsqueeze(dim=0)(xo)
    jax.block_until_ready(yo)
    assert yo.shape == (1, 3, 5, 7), yo.shape
    assert jnp.array_equal(yo, jnp.expand_dims(xo, 0))

    print("KERNEL_OK")
</pallas_src>

<mosaic_0001>
module attributes {stable_mosaic.version = 11 : i64} {
  func.func @_copy_kernel(%arg0: i32, %arg1: memref<2x1024xf32, #tpu.memory_space<vmem>>, %arg2: memref<2x1024xf32, #tpu.memory_space<vmem>>) attributes {dimension_semantics = [#tpu.dimension_semantics<parallel>], iteration_bounds = array<i64: 1>, scalar_prefetch = 0 : i64, scratch_operands = 0 : i64, tpu.core_type = #tpu.core_type<tc>, window_params = [{transform_indices = @transform_0, window_bounds = array<i64: 2, 1024>}, {transform_indices = @transform_1, window_bounds = array<i64: 2, 1024>}]} {
    %c0 = arith.constant 0 : index
    %c0_0 = arith.constant 0 : index
    %0 = vector.load %arg1[%c0, %c0_0] : memref<2x1024xf32, #tpu.memory_space<vmem>>, vector<2x1024xf32>
    %c0_1 = arith.constant 0 : index
    %c0_2 = arith.constant 0 : index
    %1 = vector.load %arg2[%c0_1, %c0_2] : memref<2x1024xf32, #tpu.memory_space<vmem>>, vector<2x1024xf32>
    tpu.vector_store %arg2[%c0_1, %c0_2], %0 {strides = array<i32>} : memref<2x1024xf32, #tpu.memory_space<vmem>>, vector<2x1024xf32>,
    return
  }
  func.func @transform_0(%arg0: i32) -> (i32, i32) {
    %c0_i32 = arith.constant 0 : i32
    %c0_i32_0 = arith.constant 0 : i32
    return %arg0, %c0_i32 : i32, i32
  }
  func.func @transform_1(%arg0: i32) -> (i32, i32) {
    %c0_i32 = arith.constant 0 : i32
    %c0_i32_0 = arith.constant 0 : i32
    return %arg0, %c0_i32 : i32, i32
  }
}

</mosaic_0001>

<bundles_post_ra>
// kernel: tpu_custom_call.1
= control target key start
LH: loop header
LB: loop body
LE: loop exit
PB: predicated region body
PF: predicated region fallthrough
CT: control target
= control target key end

     0   :  { %6 = vsyncpa [#allocation3], 0  ;;  %s116_s0 = inlined_call_operand.hbm [shape: f32[2,1024], index: 0, kind: input, shape index: {}]   ;;  %s117_s1 = inlined_call_operand.hbm [shape: f32[2,1024], index: 1, kind: output, shape index: {}]  }
   0x1   :  { %7 = vsyncpa [#allocation4], 0  ;;  %s13_s8 = sshll.u32 %s116_s0, 4  ;;  %s98_s9 = smov [#allocation2]   ;;  %s14_s8 = int_to_ptr.hbm [resolvable:$true] %s13_s8 }
   0x2   :  { %s15_s10 = sshll.u32 %s98_s9, 4  ;;  %s16_s10 = int_to_ptr.vmem [resolvable:$true] %s15_s10 }
   0x3   :  { %18 = dma.hbm_to_vmem [thread:$0]  %s14_s8, 256, %s16_s10, [#allocation3]  }
   0x4   :  { %94 = dma.done.wait [#allocation3], 256  }
   0x5   :  { %95 = vsyncadd [#allocation3], 4294967040  ;;  %s99_s11 = smov [#allocation5]   ;;  %s34_s15 = sshll.u32 %s117_s1, 4  ;;  %v23_v0 = vld [vmem:[#allocation2] sm:$0xff]  ;;  %v24_v1 = vld [vmem:[#allocation2 + $0x8] sm:$0xff]  ;;  %s35_s15 = int_to_ptr.hbm [resolvable:$true] %s34_s15 }
   0x6   :  { %s32_s12 = sshll.u32 %s99_s11, 4  ;;  %25 = vst [vmem:[#allocation5] sm:$0xff] %v23_v0  ;;  %s33_s12 = int_to_ptr.vmem [resolvable:$true] %s32_s12 }
   0x7   :  { %26 = vst [vmem:[#allocation5 + $0x8] sm:$0xff] %v24_v1 }
   0x8   :  { %37 = dma.vmem_to_hbm [thread:$0]  %s33_s12, 256, %s35_s15, [#allocation4]  }
   0x9   :  { %96 = dma.done.wait [#allocation4], 256  }
   0xa   :  { %97 = vsyncadd [#allocation4], 4294967040 }
   0xb   :  { %42 = vsyncpa [#allocation3], 1 }
   0xc   :  { %43 = vsyncpa [#allocation4], 1 }

</bundles_post_ra>
